<compile_context>
chip_gen: v5e
topology: v5e:2x2
jax: 0.10.0
libtpu: 0.0.40
codegen_flags: <defaults>
</compile_context>

<pallas_src>
import functools

import jax
import jax.numpy as jnp
from jax.experimental import pallas as pl
from jax.experimental.pallas import tpu as pltpu

_LANES = 128                        # lane width of a vreg
_ROW_STRIPE = 128                   # rows per accumulation stripe (~16 vregs f32)
_TARGET_BLOCK_BYTES = 4 * 1024 * 1024   # ~4 MiB input block (8 MiB double-buffered)
_HW_TILE_BYTES = 8 * 1024           # bytes of one row inside a block (2048 f32 / 4096 bf16)
_ROWS_TILE_CAP = 4096               # caps scratch size and trace-time unrolling


def _round_up(x, m):
    return ((x + m - 1) // m) * m


def _cdiv(a, b):
    return -(-a // b)


def _tensorcores_per_chip():
    # Best-effort detection of multi-TensorCore chips (v7x, v4/v5p megacore).
    try:
        kind = jax.devices()[0].device_kind.lower()
    except Exception:
        return 1
    if "v7" in kind or "v4" in kind or "v5p" in kind:
        return 2
    return 1


def _gap_kernel(x_ref, o_ref, acc_ref, *, hw_total, row_stripe, n_hw_blocks, hw_rem):
    # x_ref:  (rows_tile, hw_tile) input block (VMEM, auto-pipelined)
    # o_ref:  (rows_tile, 1) output block (same block across the hw axis)
    # acc_ref:(rows_tile, 128) f32 accumulator scratch
    j = pl.program_id(1)
    rows_tile, hw_tile = x_ref.shape
    n_slabs_full = hw_tile // _LANES

    @pl.when(j == 0)
    def _init():
        acc_ref[...] = jnp.zeros_like(acc_ref)

    def accumulate(n_slabs, tail_valid):
        # Stripe-wise so no live value is larger than (row_stripe, 128) f32.
        for r0 in range(0, rows_tile, row_stripe):
            r1 = min(r0 + row_stripe, rows_tile)
            acc = acc_ref[r0:r1, :]
            for k in range(n_slabs):
                slab = x_ref[r0:r1, k * _LANES:(k + 1) * _LANES].astype(jnp.float32)
                if tail_valid is not None and k == n_slabs - 1:
                    lane = jax.lax.broadcasted_iota(jnp.int32, slab.shape, 1)
                    slab = jnp.where(lane < tail_valid, slab, 0.0)
                acc = acc + slab
            acc_ref[r0:r1, :] = acc

    if hw_rem == hw_tile:
        # hw divides evenly into hw blocks: fully unmasked everywhere.
        accumulate(n_slabs_full, None)
    else:
        n_valid_slabs = _cdiv(hw_rem, _LANES)
        tail = hw_rem - (n_valid_slabs - 1) * _LANES
        tail = None if tail == _LANES else tail

        if n_hw_blocks == 1:
            accumulate(n_valid_slabs, tail)
        else:
            @pl.when(j < n_hw_blocks - 1)
            def _bulk():
                accumulate(n_slabs_full, None)

            @pl.when(j == n_hw_blocks - 1)
            def _last():
                accumulate(n_valid_slabs, tail)

    @pl.when(j == n_hw_blocks - 1)
    def _finalize():
        scale = 1.0 / hw_total
        for r0 in range(0, rows_tile, row_stripe):
            r1 = min(r0 + row_stripe, rows_tile)
            total = jnp.sum(acc_ref[r0:r1, :], axis=-1, keepdims=True)
            o_ref[r0:r1, :] = (total * scale).astype(o_ref.dtype)


def global_average_pool2d(x):
    """x: (N, C, H, W) -> (N, C), mean over spatial positions."""
    n, c, h, w = x.shape
    rows = n * c
    hw = h * w

    x2 = x.reshape(rows, hw)  # free reshape of contiguous NCHW

    itemsize = jnp.dtype(x.dtype).itemsize
    row_align = max(8, 32 // itemsize)            # 8 f32, 16 bf16, 32 int8 (sublane packing)
    hw_tile = min(_round_up(hw, _LANES), _HW_TILE_BYTES // itemsize)

    # Size rows_tile so one input block is ~4 MiB (dtype-aware, adaptive to hw).
    rows_target = max(row_align, _TARGET_BLOCK_BYTES // (hw_tile * itemsize))
    rows_tile = min(_round_up(rows, row_align),
                    _round_up(rows_target, row_align),
                    _ROWS_TILE_CAP)

    # Dual-TC chips: make sure the "parallel" rows axis has >= 2 blocks.
    tc = _tensorcores_per_chip()
    if tc > 1 and rows >= 2 * row_align:
        rows_tile = min(rows_tile, _round_up(_cdiv(rows, tc), row_align))

    row_stripe = min(rows_tile, _ROW_STRIPE)
    n_hw_blocks = _cdiv(hw, hw_tile)
    hw_rem = hw - (n_hw_blocks - 1) * hw_tile     # valid columns in the last hw block
    grid = (_cdiv(rows, rows_tile), n_hw_blocks)

    kernel = functools.partial(
        _gap_kernel, hw_total=hw, row_stripe=row_stripe,
        n_hw_blocks=n_hw_blocks, hw_rem=hw_rem)

    out = pl.pallas_call(
        kernel,
        out_shape=jax.ShapeDtypeStruct((rows, 1), x.dtype),
        grid=grid,
        in_specs=[pl.BlockSpec((rows_tile, hw_tile), lambda i, j: (i, j))],
        out_specs=pl.BlockSpec((rows_tile, 1), lambda i, j: (i, 0)),
        scratch_shapes=[pltpu.VMEM((rows_tile, _LANES), jnp.float32)],
        compiler_params=pltpu.CompilerParams(
            dimension_semantics=("parallel", "arbitrary")),
    )(x2)

    return out.reshape(n, c)


def _check(x, atol=1e-5, rtol=1e-5):
    y = global_average_pool2d(x)
    jax.block_until_ready(y)
    y_ref = jnp.mean(
        x.astype(jnp.float32).reshape(x.shape[0], x.shape[1], -1), axis=2
    ).astype(x.dtype)
    assert y.shape == y_ref.shape, (y.shape, y_ref.shape)
    assert jnp.allclose(y.astype(jnp.float32), y_ref.astype(jnp.float32),
                        atol=atol, rtol=rtol), "mismatch vs reference"
    return y


if __name__ == "__main__":
    key = jax.random.PRNGKey(0)
    k0, k1, k2 = jax.random.split(key, 3)

    # Primary small test (consistent with the module): N=2, C=4, 16x16 spatial.
    x = jax.random.normal(k0, (2, 4, 16, 16), dtype=jnp.float32)
    y = _check(x)
    assert y.shape == (2, 4)

    # Multi-hw-block reduction + straddling-slab masking path
    # (H*W = 2565 -> two hw blocks, last one partially valid).
    x2 = jax.random.normal(k1, (1, 8, 45, 57), dtype=jnp.float32)
    _check(x2)

    # bf16 path: dtype-aware tiling (16-row alignment, wider hw tile) and a
    # non-multiple-of-128 hw with an in-block masked tail.
    x3 = jax.random.normal(k2, (4, 32, 14, 14), dtype=jnp.bfloat16)
    _check(x3, atol=1e-2, rtol=1e-2)

    print("KERNEL_OK")
</pallas_src>

<mosaic_0001>
module attributes {stable_mosaic.version = 11 : i64} {
  func.func @_gap_kernel(%arg0: i32, %arg1: i32, %arg2: memref<8x256xf32, #tpu.memory_space<vmem>>, %arg3: memref<8x1xf32, #tpu.memory_space<vmem>>, %arg4: memref<8x128xf32, #tpu.memory_space<vmem>>) attributes {dimension_semantics = [#tpu.dimension_semantics<parallel>, #tpu.dimension_semantics<arbitrary>], iteration_bounds = array<i64: 1, 1>, scalar_prefetch = 0 : i64, scratch_operands = 1 : i64, tpu.core_type = #tpu.core_type<tc>, window_params = [{transform_indices = @transform_0, window_bounds = array<i64: 8, 256>}, {transform_indices = @transform_1, window_bounds = array<i64: 8, 1>}]} {
    %c0_i32 = arith.constant 0 : i32
    %0 = arith.cmpi eq, %arg1, %c0_i32 : i32
    %1 = arith.extui %0 : i1 to i32
    %c0_i32_0 = arith.constant 0 : i32
    %2 = arith.cmpi ne, %1, %c0_i32_0 : i32
    scf.if %2 {
      %cst = arith.constant 0.000000e+00 : f32
      %12 = vector.broadcast %cst : f32 to vector<8x128xf32>
      %c0_9 = arith.constant 0 : index
      %c0_10 = arith.constant 0 : index
      %13 = vector.load %arg4[%c0_9, %c0_10] : memref<8x128xf32, #tpu.memory_space<vmem>>, vector<8x128xf32>
      tpu.vector_store %arg4[%c0_9, %c0_10], %12 {strides = array<i32>} : memref<8x128xf32, #tpu.memory_space<vmem>>, vector<8x128xf32>,
    } else {
    }
    %c0 = arith.constant 0 : index
    %c0_1 = arith.constant 0 : index
    %3 = vector.load %arg4[%c0, %c0_1] : memref<8x128xf32, #tpu.memory_space<vmem>>, vector<8x128xf32>
    %c0_2 = arith.constant 0 : index
    %c0_3 = arith.constant 0 : index
    %4 = vector.load %arg2[%c0_2, %c0_3] : memref<8x256xf32, #tpu.memory_space<vmem>>, vector<8x128xf32>
    %5 = arith.addf %3, %4 : vector<8x128xf32>
    %c0_4 = arith.constant 0 : index
    %c128 = arith.constant 128 : index
    %6 = vector.load %arg2[%c0_4, %c128] : memref<8x256xf32, #tpu.memory_space<vmem>>, vector<8x128xf32>
    %7 = arith.addf %5, %6 : vector<8x128xf32>
    %c0_5 = arith.constant 0 : index
    %c0_6 = arith.constant 0 : index
    %8 = vector.load %arg4[%c0_5, %c0_6] : memref<8x128xf32, #tpu.memory_space<vmem>>, vector<8x128xf32>
    tpu.vector_store %arg4[%c0_5, %c0_6], %7 {strides = array<i32>} : memref<8x128xf32, #tpu.memory_space<vmem>>, vector<8x128xf32>,
    %c0_i32_7 = arith.constant 0 : i32
    %9 = arith.cmpi eq, %arg1, %c0_i32_7 : i32
    %10 = arith.extui %9 : i1 to i32
    %c0_i32_8 = arith.constant 0 : i32
    %11 = arith.cmpi ne, %10, %c0_i32_8 : i32
    scf.if %11 {
      %c0_9 = arith.constant 0 : index
      %c0_10 = arith.constant 0 : index
      %12 = vector.load %arg4[%c0_9, %c0_10] : memref<8x128xf32, #tpu.memory_space<vmem>>, vector<8x128xf32>
      %cst = arith.constant dense<0.000000e+00> : vector<8xf32>
      %13 = vector.multi_reduction <add>, %12, %cst [1] : vector<8x128xf32> to vector<8xf32>
      %14 = vector.shape_cast %13 : vector<8xf32> to vector<8x1xf32>
      %cst_11 = arith.constant 3.906250e-03 : f32
      %15 = vector.broadcast %cst_11 : f32 to vector<8x1xf32>
      %16 = arith.mulf %14, %15 : vector<8x1xf32>
      %c0_12 = arith.constant 0 : index
      %c0_13 = arith.constant 0 : index
      %17 = vector.load %arg3[%c0_12, %c0_13] : memref<8x1xf32, #tpu.memory_space<vmem>>, vector<8x1xf32>
      tpu.vector_store %arg3[%c0_12, %c0_13], %16 {strides = array<i32>} : memref<8x1xf32, #tpu.memory_space<vmem>>, vector<8x1xf32>,
    } else {
    }
    return
  }
  func.func @transform_0(%arg0: i32, %arg1: i32) -> (i32, i32) {
    %c0_i32 = arith.constant 0 : i32
    return %arg0, %arg1 : i32, i32
  }
  func.func @transform_1(%arg0: i32, %arg1: i32) -> (i32, i32) {
    %c0_i32 = arith.constant 0 : i32
    %c0_i32_0 = arith.constant 0 : i32
    return %arg0, %c0_i32 : i32, i32
  }
}

</mosaic_0001>

<bundles_post_ra>
// kernel: tpu_custom_call.1
= control target key start
LH: loop header
LB: loop body
LE: loop exit
PB: predicated region body
PF: predicated region fallthrough
CT: control target
= control target key end

     0   :  { %6 = vsyncpa [#allocation4], 0  ;;  %s74_s9 = smov [#allocation3]   ;;  %s91_s0 = inlined_call_operand.hbm [shape: f32[8,256], index: 0, kind: input, shape index: {}]   ;;  %s92_s1 = inlined_call_operand.vmem [shape: f32[8,1], index: 1, kind: output, shape index: {}]  }
   0x1   :  { %s12_s8 = sshll.u32 %s91_s0, 4  ;;  %s14_s10 = sshll.u32 %s74_s9, 4  ;;  %s13_s8 = int_to_ptr.hbm [resolvable:$true] %s12_s8  ;;  %s15_s10 = int_to_ptr.vmem [resolvable:$true] %s14_s10 }
   0x2   :  { %17 = dma.hbm_to_vmem [thread:$0]  %s13_s8, 256, %s15_s10, [#allocation4]  }
   0x3   :  { %72 = dma.done.wait [#allocation4], 256  }
   0x4   :  { %73 = vsyncadd [#allocation4], 4294967040  ;;  %v28_v0 = vld [vmem:[#allocation3] sm:$0xff]  ;;  %v30_v1 = vld [vmem:[#allocation3 + $0x8] sm:$0xff]  ;;  %vm40_vm0 = vcmask 7168  }
   0x5   :  { %v31_v2 = vadd.f32 %v30_v1, %v28_v0 }
   0x7   :  { %37 = vadd.xlane.f32.xlu0 %v31_v2 }
  0x7a   :  { %v38_v3 = vpop.xlane.xlu0 %37 }
  0x7b   :  { %v39_v4 = vmul.f32 0.00390625, %v38_v3 }
  0x7d   :  { %41 = vst.msk [vmem:[%s92_s1] sm:$0xff] %vm40_vm0, %v39_v4 }
  0x7e   :  { %46 = vsyncpa [#allocation4], 1 }

</bundles_post_ra>
